<compile_context>
chip_gen: v5e
topology: v5e:2x2
jax: 0.10.0
libtpu: 0.0.40
codegen_flags: <defaults>
</compile_context>

<pallas_src>
import jax
import jax.numpy as jnp
import numpy as np
from jax.experimental import pallas as pl
from jax.experimental.pallas import tpu as pltpu

# ----------------------------- model dimensions -----------------------------
D0 = D1 = D2 = D3 = 8          # layer_dim0..3
WP_DIM = 16                    # waypoint input / output dim
PHYS_DIM = 18                  # physics_input_dim
GEAR_LEN = 24                  # gear_max_length
GEAR_DIM = 4                   # gear_dim
GEAR_HID = 8                   # gear encoder latent
ENC_HID = 64                   # physics encoder hidden

# single concatenated batch input: [wp | phys | gear | zero pad] -> 64 lanes
WP_OFF, PHYS_OFF, GEAR_OFF = 0, WP_DIM, WP_DIM + PHYS_DIM
XIN_DIM = 64

# packed lane offsets inside the (TB, LAT_PAD) fused hypernet output
OFF_W0, OFF_W1, OFF_W2, OFF_W3 = 0, 128, 192, 256
OFF_B0, OFF_B1, OFF_B2, OFF_B3, OFF_B4 = 320, 328, 336, 344, 352
OFF_W4 = 384
LAT_PAD = 512                  # 4 x 128-lane chunks (down from 1280)

_PIECES = (  # (name, size, packed lane offset), in the reference latent order
    ("w0", WP_DIM * D0, OFF_W0), ("b0", D0, OFF_B0),
    ("w1", D0 * D1, OFF_W1),     ("b1", D1, OFF_B1),
    ("w2", D1 * D2, OFF_W2),     ("b2", D2, OFF_B2),
    ("w3", D2 * D3, OFF_W3),     ("b3", D3, OFF_B3),
    ("w4", WP_DIM * D3, OFF_W4), ("b4", WP_DIM, OFF_B4),
)
LATENT = sum(s for _, s, _ in _PIECES)   # physics_latent_dim (= 496)
IDX = [0]
for _, _s, _ in _PIECES:
    IDX.append(IDX[-1] + _s)


def _round_up(x, m):
    return ((x + m - 1) // m) * m


# ------------------------- one-hot expand / reduce mats ----------------------
def _expand_mat(d_in, d_out, rows):
    """(rows, d_in*d_out) one-hot with E[i, o*d_in + i] = 1 (rows >= d_in; extra rows 0)."""
    r = np.arange(rows)[:, None]
    c = np.arange(d_in * d_out)[None, :]
    return jnp.asarray((r == (c % d_in)).astype(np.float32))


def _reduce_mat(d_in, d_out):
    """(d_in*d_out, d_out) one-hot with R[o*d_in + i, o] = 1."""
    r = np.arange(d_in * d_out)[:, None]
    c = np.arange(d_out)[None, :]
    return jnp.asarray(((r // d_in) == c).astype(np.float32))


# ------------------------------- fused kernel --------------------------------
def mvadapt_fused_kernel(xin_ref,
                         gw1t_ref, gb1_ref, gw2t_ref, gb2_ref,
                         ew1pt_ref, ew1gt_ref, eb1_ref,
                         ew2t_ref, eb2_ref,
                         e0_ref, r0_ref, em_ref, rm_ref, e4_ref, r4_ref,
                         out_ref):
    f32 = jnp.float32
    xin = xin_ref[...]                                       # (TB, 64)

    # ForwardGearEncoder: gear columns are selected by the zero-padded rows of gw1t.
    g1 = jnp.maximum(
        jnp.dot(xin, gw1t_ref[...], preferred_element_type=f32) + gb1_ref[...], 0.0)
    gl = jnp.maximum(
        jnp.dot(g1, gw2t_ref[...], preferred_element_type=f32) + gb2_ref[...], 0.0)

    # PhysicsEncoder layer 1: phys columns selected by zero-padded rows of ew1pt.
    h = jnp.maximum(
        jnp.dot(xin, ew1pt_ref[...], preferred_element_type=f32)
        + jnp.dot(gl, ew1gt_ref[...], preferred_element_type=f32)
        + eb1_ref[...], 0.0)                                 # (TB, 64)

    # Hypernet: ONE fused matmul produces every per-sample weight/bias piece.
    # (bf16 ew2t => single-pass MXU; accumulation stays f32.)
    ew2t = ew2t_ref[...]
    lat = jnp.dot(h.astype(ew2t.dtype), ew2t,
                  preferred_element_type=f32) + eb2_ref[...]  # (TB, LAT_PAD)

    def piece(off, width):
        return lat[:, off:off + width]

    # Per-sample dynamic linear y[b,o] = sum_i x[b,i]*w[b, o*d_in+i] + b[b,o], realized
    # as 2-D matmuls: expand x across lanes -> elementwise-mul -> segment-reduce.
    def dyn(x, e, r, w_off, w_len, b_off, b_len, relu):
        x_exp = jnp.dot(x, e, preferred_element_type=f32)
        y = jnp.dot(x_exp * piece(w_off, w_len), r,
                    preferred_element_type=f32) + piece(b_off, b_len)
        return jnp.maximum(y, 0.0) if relu else y

    e0, r0 = e0_ref[...], r0_ref[...]
    em, rm = em_ref[...], rm_ref[...]
    e4, r4 = e4_ref[...], r4_ref[...]

    x = dyn(xin, e0, r0, OFF_W0, WP_DIM * D0, OFF_B0, D0, True)   # wp rows of e0 only
    x = dyn(x, em, rm, OFF_W1, D0 * D1, OFF_B1, D1, True)
    x = dyn(x, em, rm, OFF_W2, D1 * D2, OFF_B2, D2, True)
    x = dyn(x, em, rm, OFF_W3, D2 * D3, OFF_B3, D3, True)
    # 16-lane output block -> masked stores; accepted (tiny vs. the matmul work).
    out_ref[...] = dyn(x, e4, r4, OFF_W4, D3 * WP_DIM, OFF_B4, WP_DIM, False)


# -------------------------- parameter pre-packing ----------------------------
def prepare_params(p, hypernet_dtype=jnp.float32):
    """Pre-transpose / zero-pad statics once; pack ew2/eb2 into LAT_PAD lanes.

    hypernet_dtype=jnp.bfloat16 recommended on v6e/v7x (single-pass MXU, half the
    resident ew2t); keep float32 on v5e or for bit-tight numerics.
    """
    ew2t = p["ew2"].T                                        # (64, LATENT)
    w_pack = jnp.zeros((ENC_HID, LAT_PAD), jnp.float32)
    b_pack = jnp.zeros((1, LAT_PAD), jnp.float32)
    src = 0
    for _, size, dst in _PIECES:
        w_pack = w_pack.at[:, dst:dst + size].set(ew2t[:, src:src + size])
        b_pack = b_pack.at[:, dst:dst + size].set(p["eb2"][:, src:src + size])
        src += size

    gw1t = jnp.zeros((XIN_DIM, GEAR_HID), jnp.float32)
    gw1t = gw1t.at[GEAR_OFF:GEAR_OFF + GEAR_LEN, :].set(p["gw1"].T)
    ew1pt = jnp.zeros((XIN_DIM, ENC_HID), jnp.float32)
    ew1pt = ew1pt.at[PHYS_OFF:PHYS_OFF + PHYS_DIM, :].set(p["ew1p"].T)

    return {
        "gw1t": gw1t, "gb1": p["gb1"],
        "gw2t": p["gw2"].T, "gb2": p["gb2"],
        "ew1pt": ew1pt, "ew1gt": p["ew1g"].T, "eb1": p["eb1"],
        "ew2t": w_pack.astype(hypernet_dtype), "eb2": b_pack,
        # one-hot expand/reduce constants (built once, reused by every grid step)
        "e0": _expand_mat(WP_DIM, D0, XIN_DIM), "r0": _reduce_mat(WP_DIM, D0),
        "em": _expand_mat(D0, D1, D0),          "rm": _reduce_mat(D0, D1),
        "e4": _expand_mat(D3, WP_DIM, D3),      "r4": _reduce_mat(D3, WP_DIM),
    }


# --------------------------------- MVAdapt -----------------------------------
def mvadapt_forward(waypoint_input, physics_params, gear_params, packed, *,
                    tile_b=1024):
    if waypoint_input.ndim == 1:
        waypoint_input = waypoint_input[None, :]
    if physics_params.ndim == 1:
        physics_params = physics_params[None, :]
    if gear_params.ndim == 1:
        gear_params = gear_params[None, :]
    B = waypoint_input.shape[0]

    # Single concatenated batch stream: [wp | phys | gear | zeros] -> (B, 64).
    xin = jnp.concatenate(
        [waypoint_input, physics_params, gear_params], axis=1).astype(jnp.float32)

    # Batch tile: multiple of 8 sublanes; big enough to amortize per-step overhead and
    # MXU fill/drain, capped so multi-tile batches always give >= 2 grid steps (v7x TCs).
    tile_b = max(8, _round_up(tile_b, 8))
    b_min = _round_up(B, 8)
    TB = min(tile_b, b_min)
    if b_min > 8:
        TB = min(TB, max(8, _round_up((B + 1) // 2, 8)))
    Bp = _round_up(B, TB)
    num_steps = Bp // TB
    xin = jnp.pad(xin, ((0, Bp - B), (0, XIN_DIM - xin.shape[1])))

    def batch_spec(n):
        return pl.BlockSpec((TB, n), lambda i: (i, 0))

    def const_spec(shape):
        return pl.BlockSpec(shape, lambda i: (0, 0))

    # advisory cost estimate (statics counted once, not per step)
    flops_row = 2 * (XIN_DIM * GEAR_HID + GEAR_HID * GEAR_DIM
                     + XIN_DIM * ENC_HID + GEAR_DIM * ENC_HID
                     + ENC_HID * LAT_PAD
                     + XIN_DIM * WP_DIM * D0 + WP_DIM * D0 * D0
                     + 3 * (D0 * D0 * D1 + D0 * D1 * D1)
                     + D3 * D3 * WP_DIM + D3 * WP_DIM * WP_DIM)
    static_bytes = sum(int(np.prod(v.shape)) * v.dtype.itemsize for v in packed.values())
    cost = pl.CostEstimate(flops=int(Bp * flops_row), transcendentals=0,
                           bytes_accessed=int(Bp * (XIN_DIM + WP_DIM) * 4 + static_bytes))

    out = pl.pallas_call(
        mvadapt_fused_kernel,
        grid=(num_steps,),
        in_specs=[
            batch_spec(XIN_DIM),
            const_spec((XIN_DIM, GEAR_HID)), const_spec((1, GEAR_HID)),
            const_spec((GEAR_HID, GEAR_DIM)), const_spec((1, GEAR_DIM)),
            const_spec((XIN_DIM, ENC_HID)), const_spec((GEAR_DIM, ENC_HID)),
            const_spec((1, ENC_HID)),
            const_spec((ENC_HID, LAT_PAD)), const_spec((1, LAT_PAD)),
            const_spec((XIN_DIM, WP_DIM * D0)), const_spec((WP_DIM * D0, D0)),
            const_spec((D0, D0 * D1)), const_spec((D0 * D1, D1)),
            const_spec((D3, D3 * WP_DIM)), const_spec((D3 * WP_DIM, WP_DIM)),
        ],
        out_specs=batch_spec(WP_DIM),
        out_shape=jax.ShapeDtypeStruct((Bp, WP_DIM), jnp.float32),
        compiler_params=pltpu.CompilerParams(
            dimension_semantics=("parallel",),
            vmem_limit_bytes=48 * 1024 * 1024),
        cost_estimate=cost,
    )(xin,
      packed["gw1t"], packed["gb1"], packed["gw2t"], packed["gb2"],
      packed["ew1pt"], packed["ew1gt"], packed["eb1"],
      packed["ew2t"], packed["eb2"],
      packed["e0"], packed["r0"], packed["em"], packed["rm"],
      packed["e4"], packed["r4"])
    return out[:B]


# -------------------------- deterministic parameters -------------------------
def init_params(key):
    keys = jax.random.split(key, 10)
    s = 0.1

    def u(k, shape):
        return jax.random.uniform(k, shape, jnp.float32, -1.0, 1.0) * s

    ew1 = u(keys[4], (ENC_HID, PHYS_DIM + GEAR_DIM))
    return {
        "gw1": u(keys[0], (GEAR_HID, GEAR_LEN)),
        "gb1": u(keys[1], (1, GEAR_HID)),
        "gw2": u(keys[2], (GEAR_DIM, GEAR_HID)),
        "gb2": u(keys[3], (1, GEAR_DIM)),
        "ew1p": ew1[:, :PHYS_DIM],
        "ew1g": ew1[:, PHYS_DIM:],
        "eb1": u(keys[5], (1, ENC_HID)),
        "ew2": u(keys[6], (LATENT, ENC_HID)),
        "eb2": u(keys[7], (1, LATENT)),
    }


# ----------------------------- pure-JAX reference ----------------------------
def reference_forward(wp, phys, gear, p, hypernet_dtype=jnp.float32):
    g1 = jax.nn.relu(gear @ p["gw1"].T + p["gb1"])
    gl = jax.nn.relu(g1 @ p["gw2"].T + p["gb2"])
    ew1 = jnp.concatenate([p["ew1p"], p["ew1g"]], axis=1)
    cat = jnp.concatenate([phys, gl], axis=1)
    h = jax.nn.relu(cat @ ew1.T + p["eb1"])
    hq = h.astype(hypernet_dtype).astype(jnp.float32)
    ew2q = p["ew2"].astype(hypernet_dtype).astype(jnp.float32)
    w = hq @ ew2q.T + p["eb2"]
    B = wp.shape[0]
    w0 = w[:, IDX[0]:IDX[1]].reshape(B, D0, WP_DIM)
    b0 = w[:, IDX[1]:IDX[2]]
    w1 = w[:, IDX[2]:IDX[3]].reshape(B, D1, D0)
    b1 = w[:, IDX[3]:IDX[4]]
    w2 = w[:, IDX[4]:IDX[5]].reshape(B, D2, D1)
    b2 = w[:, IDX[5]:IDX[6]]
    w3 = w[:, IDX[6]:IDX[7]].reshape(B, D3, D2)
    b3 = w[:, IDX[7]:IDX[8]]
    w4 = w[:, IDX[8]:IDX[9]].reshape(B, WP_DIM, D3)
    b4 = w[:, IDX[9]:IDX[10]]
    x = jax.nn.relu(jnp.einsum("bi,boi->bo", wp, w0) + b0)
    x = jax.nn.relu(jnp.einsum("bi,boi->bo", x, w1) + b1)
    x = jax.nn.relu(jnp.einsum("bi,boi->bo", x, w2) + b2)
    x = jax.nn.relu(jnp.einsum("bi,boi->bo", x, w3) + b3)
    return jnp.einsum("bi,boi->bo", x, w4) + b4


# ----------------------------------- main ------------------------------------
if __name__ == "__main__":
    key = jax.random.PRNGKey(0)
    kp, kw, kf, kg = jax.random.split(key, 4)
    params = init_params(kp)

    B = 2
    waypoint_input = jax.random.normal(kw, (B, WP_DIM), jnp.float32)
    physics_params = jax.random.normal(kf, (B, PHYS_DIM), jnp.float32)
    gear_params = jax.random.normal(kg, (B, GEAR_LEN), jnp.float32)

    # f32 hypernet weights (recommended on v5e / strict numerics)
    packed_f32 = prepare_params(params)
    out = jax.block_until_ready(
        mvadapt_forward(waypoint_input, physics_params, gear_params, packed_f32))
    ref = reference_forward(waypoint_input, physics_params, gear_params, params)
    assert out.shape == (B, WP_DIM)
    assert jnp.allclose(out, ref, atol=1e-4, rtol=1e-4), (out, ref)

    # bf16 hypernet weights (recommended on v6e/v7x): compare against a reference that
    # applies the same bf16 rounding; loose tolerance covers MXU-vs-XLA accumulation
    # order near bf16 rounding boundaries.
    packed_bf16 = prepare_params(params, hypernet_dtype=jnp.bfloat16)
    out_bf16 = jax.block_until_ready(
        mvadapt_forward(waypoint_input, physics_params, gear_params, packed_bf16))
    ref_bf16 = reference_forward(waypoint_input, physics_params, gear_params, params,
                                 hypernet_dtype=jnp.bfloat16)
    assert jnp.allclose(out_bf16, ref_bf16, atol=1e-2, rtol=1e-2), (out_bf16, ref_bf16)

    print("KERNEL_OK")
</pallas_src>

<mosaic_0001>
module attributes {stable_mosaic.version = 11 : i64} {
  func.func @mvadapt_fused_kernel(%arg0: i32, %arg1: memref<8x64xf32, #tpu.memory_space<vmem>>, %arg2: memref<64x8xf32, #tpu.memory_space<vmem>>, %arg3: memref<1x8xf32, #tpu.memory_space<vmem>>, %arg4: memref<8x4xf32, #tpu.memory_space<vmem>>, %arg5: memref<1x4xf32, #tpu.memory_space<vmem>>, %arg6: memref<64x64xf32, #tpu.memory_space<vmem>>, %arg7: memref<4x64xf32, #tpu.memory_space<vmem>>, %arg8: memref<1x64xf32, #tpu.memory_space<vmem>>, %arg9: memref<64x512xf32, #tpu.memory_space<vmem>>, %arg10: memref<1x512xf32, #tpu.memory_space<vmem>>, %arg11: memref<64x128xf32, #tpu.memory_space<vmem>>, %arg12: memref<128x8xf32, #tpu.memory_space<vmem>>, %arg13: memref<8x64xf32, #tpu.memory_space<vmem>>, %arg14: memref<64x8xf32, #tpu.memory_space<vmem>>, %arg15: memref<8x128xf32, #tpu.memory_space<vmem>>, %arg16: memref<128x16xf32, #tpu.memory_space<vmem>>, %arg17: memref<8x16xf32, #tpu.memory_space<vmem>>) attributes {dimension_semantics = [#tpu.dimension_semantics<parallel>], iteration_bounds = array<i64: 1>, scalar_prefetch = 0 : i64, scratch_operands = 0 : i64, tpu.core_type = #tpu.core_type<tc>, window_params = [{transform_indices = @transform_0, window_bounds = array<i64: 8, 64>}, {pipeline_mode = #tpu.pipeline_mode<synchronous>, transform_indices = @transform_1, window_bounds = array<i64: 64, 8>}, {pipeline_mode = #tpu.pipeline_mode<synchronous>, transform_indices = @transform_2, window_bounds = array<i64: 1, 8>}, {pipeline_mode = #tpu.pipeline_mode<synchronous>, transform_indices = @transform_3, window_bounds = array<i64: 8, 4>}, {pipeline_mode = #tpu.pipeline_mode<synchronous>, transform_indices = @transform_4, window_bounds = array<i64: 1, 4>}, {pipeline_mode = #tpu.pipeline_mode<synchronous>, transform_indices = @transform_5, window_bounds = array<i64: 64, 64>}, {pipeline_mode = #tpu.pipeline_mode<synchronous>, transform_indices = @transform_6, window_bounds = array<i64: 4, 64>}, {pipeline_mode = #tpu.pipeline_mode<synchronous>, transform_indices = @transform_7, window_bounds = array<i64: 1, 64>}, {pipeline_mode = #tpu.pipeline_mode<synchronous>, transform_indices = @transform_8, window_bounds = array<i64: 64, 512>}, {pipeline_mode = #tpu.pipeline_mode<synchronous>, transform_indices = @transform_9, window_bounds = array<i64: 1, 512>}, {pipeline_mode = #tpu.pipeline_mode<synchronous>, transform_indices = @transform_10, window_bounds = array<i64: 64, 128>}, {pipeline_mode = #tpu.pipeline_mode<synchronous>, transform_indices = @transform_11, window_bounds = array<i64: 128, 8>}, {pipeline_mode = #tpu.pipeline_mode<synchronous>, transform_indices = @transform_12, window_bounds = array<i64: 8, 64>}, {pipeline_mode = #tpu.pipeline_mode<synchronous>, transform_indices = @transform_13, window_bounds = array<i64: 64, 8>}, {pipeline_mode = #tpu.pipeline_mode<synchronous>, transform_indices = @transform_14, window_bounds = array<i64: 8, 128>}, {pipeline_mode = #tpu.pipeline_mode<synchronous>, transform_indices = @transform_15, window_bounds = array<i64: 128, 16>}, {transform_indices = @transform_16, window_bounds = array<i64: 8, 16>}]} {
    %c0 = arith.constant 0 : index
    %c0_0 = arith.constant 0 : index
    %0 = vector.load %arg1[%c0, %c0_0] : memref<8x64xf32, #tpu.memory_space<vmem>>, vector<8x64xf32>
    %c0_1 = arith.constant 0 : index
    %c0_2 = arith.constant 0 : index
    %1 = vector.load %arg2[%c0_1, %c0_2] : memref<64x8xf32, #tpu.memory_space<vmem>>, vector<64x8xf32>
    %cst = arith.constant dense<0.000000e+00> : vector<8x8xf32>
    %2 = tpu.matmul %0, %1, %cst {dimension_numbers = #tpu.dot_dimension_numbers<[1], [0], [0], [1], [0, 0, 1, 1], [], []>} : vector<8x64xf32>, vector<64x8xf32>, vector<8x8xf32> -> vector<8x8xf32>
    %c0_3 = arith.constant 0 : index
    %c0_4 = arith.constant 0 : index
    %3 = vector.load %arg3[%c0_3, %c0_4] : memref<1x8xf32, #tpu.memory_space<vmem>>, vector<1x8xf32>
    %4 = vector.broadcast %3 : vector<1x8xf32> to vector<8x8xf32>
    %5 = arith.addf %2, %4 : vector<8x8xf32>
    %cst_5 = arith.constant 0.000000e+00 : f32
    %6 = vector.broadcast %cst_5 : f32 to vector<8x8xf32>
    %7 = arith.maximumf %5, %6 : vector<8x8xf32>
    %c0_6 = arith.constant 0 : index
    %c0_7 = arith.constant 0 : index
    %8 = vector.load %arg4[%c0_6, %c0_7] : memref<8x4xf32, #tpu.memory_space<vmem>>, vector<8x4xf32>
    %cst_8 = arith.constant dense<0.000000e+00> : vector<8x4xf32>
    %9 = tpu.matmul %7, %8, %cst_8 {dimension_numbers = #tpu.dot_dimension_numbers<[1], [0], [0], [1], [0, 0, 1, 1], [], []>} : vector<8x8xf32>, vector<8x4xf32>, vector<8x4xf32> -> vector<8x4xf32>
    %c0_9 = arith.constant 0 : index
    %c0_10 = arith.constant 0 : index
    %10 = vector.load %arg5[%c0_9, %c0_10] : memref<1x4xf32, #tpu.memory_space<vmem>>, vector<1x4xf32>
    %11 = vector.broadcast %10 : vector<1x4xf32> to vector<8x4xf32>
    %12 = arith.addf %9, %11 : vector<8x4xf32>
    %cst_11 = arith.constant 0.000000e+00 : f32
    %13 = vector.broadcast %cst_11 : f32 to vector<8x4xf32>
    %14 = arith.maximumf %12, %13 : vector<8x4xf32>
    %c0_12 = arith.constant 0 : index
    %c0_13 = arith.constant 0 : index
    %15 = vector.load %arg6[%c0_12, %c0_13] : memref<64x64xf32, #tpu.memory_space<vmem>>, vector<64x64xf32>
    %cst_14 = arith.constant dense<0.000000e+00> : vector<8x64xf32>
    %16 = tpu.matmul %0, %15, %cst_14 {dimension_numbers = #tpu.dot_dimension_numbers<[1], [0], [0], [1], [0, 0, 1, 1], [], []>} : vector<8x64xf32>, vector<64x64xf32>, vector<8x64xf32> -> vector<8x64xf32>
    %c0_15 = arith.constant 0 : index
    %c0_16 = arith.constant 0 : index
    %17 = vector.load %arg7[%c0_15, %c0_16] : memref<4x64xf32, #tpu.memory_space<vmem>>, vector<4x64xf32>
    %cst_17 = arith.constant dense<0.000000e+00> : vector<8x64xf32>
    %18 = tpu.matmul %14, %17, %cst_17 {dimension_numbers = #tpu.dot_dimension_numbers<[1], [0], [0], [1], [0, 0, 1, 1], [], []>} : vector<8x4xf32>, vector<4x64xf32>, vector<8x64xf32> -> vector<8x64xf32>
    %19 = arith.addf %16, %18 : vector<8x64xf32>
    %c0_18 = arith.constant 0 : index
    %c0_19 = arith.constant 0 : index
    %20 = vector.load %arg8[%c0_18, %c0_19] : memref<1x64xf32, #tpu.memory_space<vmem>>, vector<1x64xf32>
    %21 = vector.broadcast %20 : vector<1x64xf32> to vector<8x64xf32>
    %22 = arith.addf %19, %21 : vector<8x64xf32>
    %cst_20 = arith.constant 0.000000e+00 : f32
    %23 = vector.broadcast %cst_20 : f32 to vector<8x64xf32>
    %24 = arith.maximumf %22, %23 : vector<8x64xf32>
    %c0_21 = arith.constant 0 : index
    %c0_22 = arith.constant 0 : index
    %25 = vector.load %arg9[%c0_21, %c0_22] : memref<64x512xf32, #tpu.memory_space<vmem>>, vector<64x512xf32>
    %cst_23 = arith.constant dense<0.000000e+00> : vector<8x512xf32>
    %26 = tpu.matmul %24, %25, %cst_23 {dimension_numbers = #tpu.dot_dimension_numbers<[1], [0], [0], [1], [0, 0, 1, 1], [], []>} : vector<8x64xf32>, vector<64x512xf32>, vector<8x512xf32> -> vector<8x512xf32>
    %c0_24 = arith.constant 0 : index
    %c0_25 = arith.constant 0 : index
    %27 = vector.load %arg10[%c0_24, %c0_25] : memref<1x512xf32, #tpu.memory_space<vmem>>, vector<1x512xf32>
    %28 = vector.broadcast %27 : vector<1x512xf32> to vector<8x512xf32>
    %29 = arith.addf %26, %28 : vector<8x512xf32>
    %c0_26 = arith.constant 0 : index
    %c0_27 = arith.constant 0 : index
    %30 = vector.load %arg11[%c0_26, %c0_27] : memref<64x128xf32, #tpu.memory_space<vmem>>, vector<64x128xf32>
    %c0_28 = arith.constant 0 : index
    %c0_29 = arith.constant 0 : index
    %31 = vector.load %arg12[%c0_28, %c0_29] : memref<128x8xf32, #tpu.memory_space<vmem>>, vector<128x8xf32>
    %c0_30 = arith.constant 0 : index
    %c0_31 = arith.constant 0 : index
    %32 = vector.load %arg13[%c0_30, %c0_31] : memref<8x64xf32, #tpu.memory_space<vmem>>, vector<8x64xf32>
    %c0_32 = arith.constant 0 : index
    %c0_33 = arith.constant 0 : index
    %33 = vector.load %arg14[%c0_32, %c0_33] : memref<64x8xf32, #tpu.memory_space<vmem>>, vector<64x8xf32>
    %c0_34 = arith.constant 0 : index
    %c0_35 = arith.constant 0 : index
    %34 = vector.load %arg15[%c0_34, %c0_35] : memref<8x128xf32, #tpu.memory_space<vmem>>, vector<8x128xf32>
    %c0_36 = arith.constant 0 : index
    %c0_37 = arith.constant 0 : index
    %35 = vector.load %arg16[%c0_36, %c0_37] : memref<128x16xf32, #tpu.memory_space<vmem>>, vector<128x16xf32>
    %cst_38 = arith.constant dense<0.000000e+00> : vector<8x128xf32>
    %36 = tpu.matmul %0, %30, %cst_38 {dimension_numbers = #tpu.dot_dimension_numbers<[1], [0], [0], [1], [0, 0, 1, 1], [], []>} : vector<8x64xf32>, vector<64x128xf32>, vector<8x128xf32> -> vector<8x128xf32>
    %37 = vector.extract_strided_slice %29 {offsets = [0, 0], sizes = [8, 128], strides = [1, 1]} : vector<8x512xf32> to vector<8x128xf32>
    %38 = arith.mulf %36, %37 : vector<8x128xf32>
    %cst_39 = arith.constant dense<0.000000e+00> : vector<8x8xf32>
    %39 = tpu.matmul %38, %31, %cst_39 {dimension_numbers = #tpu.dot_dimension_numbers<[1], [0], [0], [1], [0, 0, 1, 1], [], []>} : vector<8x128xf32>, vector<128x8xf32>, vector<8x8xf32> -> vector<8x8xf32>
    %40 = vector.extract_strided_slice %29 {offsets = [0, 320], sizes = [8, 8], strides = [1, 1]} : vector<8x512xf32> to vector<8x8xf32>
    %41 = arith.addf %39, %40 : vector<8x8xf32>
    %cst_40 = arith.constant 0.000000e+00 : f32
    %42 = vector.broadcast %cst_40 : f32 to vector<8x8xf32>
    %43 = arith.maximumf %41, %42 : vector<8x8xf32>
    %cst_41 = arith.constant dense<0.000000e+00> : vector<8x64xf32>
    %44 = tpu.matmul %43, %32, %cst_41 {dimension_numbers = #tpu.dot_dimension_numbers<[1], [0], [0], [1], [0, 0, 1, 1], [], []>} : vector<8x8xf32>, vector<8x64xf32>, vector<8x64xf32> -> vector<8x64xf32>
    %45 = vector.extract_strided_slice %29 {offsets = [0, 128], sizes = [8, 64], strides = [1, 1]} : vector<8x512xf32> to vector<8x64xf32>
    %46 = arith.mulf %44, %45 : vector<8x64xf32>
    %cst_42 = arith.constant dense<0.000000e+00> : vector<8x8xf32>
    %47 = tpu.matmul %46, %33, %cst_42 {dimension_numbers = #tpu.dot_dimension_numbers<[1], [0], [0], [1], [0, 0, 1, 1], [], []>} : vector<8x64xf32>, vector<64x8xf32>, vector<8x8xf32> -> vector<8x8xf32>
    %48 = vector.extract_strided_slice %29 {offsets = [0, 328], sizes = [8, 8], strides = [1, 1]} : vector<8x512xf32> to vector<8x8xf32>
    %49 = arith.addf %47, %48 : vector<8x8xf32>
    %cst_43 = arith.constant 0.000000e+00 : f32
    %50 = vector.broadcast %cst_43 : f32 to vector<8x8xf32>
    %51 = arith.maximumf %49, %50 : vector<8x8xf32>
    %cst_44 = arith.constant dense<0.000000e+00> : vector<8x64xf32>
    %52 = tpu.matmul %51, %32, %cst_44 {dimension_numbers = #tpu.dot_dimension_numbers<[1], [0], [0], [1], [0, 0, 1, 1], [], []>} : vector<8x8xf32>, vector<8x64xf32>, vector<8x64xf32> -> vector<8x64xf32>
    %53 = vector.extract_strided_slice %29 {offsets = [0, 192], sizes = [8, 64], strides = [1, 1]} : vector<8x512xf32> to vector<8x64xf32>
    %54 = arith.mulf %52, %53 : vector<8x64xf32>
    %cst_45 = arith.constant dense<0.000000e+00> : vector<8x8xf32>
    %55 = tpu.matmul %54, %33, %cst_45 {dimension_numbers = #tpu.dot_dimension_numbers<[1], [0], [0], [1], [0, 0, 1, 1], [], []>} : vector<8x64xf32>, vector<64x8xf32>, vector<8x8xf32> -> vector<8x8xf32>
    %56 = vector.extract_strided_slice %29 {offsets = [0, 336], sizes = [8, 8], strides = [1, 1]} : vector<8x512xf32> to vector<8x8xf32>
    %57 = arith.addf %55, %56 : vector<8x8xf32>
    %cst_46 = arith.constant 0.000000e+00 : f32
    %58 = vector.broadcast %cst_46 : f32 to vector<8x8xf32>
    %59 = arith.maximumf %57, %58 : vector<8x8xf32>
    %cst_47 = arith.constant dense<0.000000e+00> : vector<8x64xf32>
    %60 = tpu.matmul %59, %32, %cst_47 {dimension_numbers = #tpu.dot_dimension_numbers<[1], [0], [0], [1], [0, 0, 1, 1], [], []>} : vector<8x8xf32>, vector<8x64xf32>, vector<8x64xf32> -> vector<8x64xf32>
    %61 = vector.extract_strided_slice %29 {offsets = [0, 256], sizes = [8, 64], strides = [1, 1]} : vector<8x512xf32> to vector<8x64xf32>
    %62 = arith.mulf %60, %61 : vector<8x64xf32>
    %cst_48 = arith.constant dense<0.000000e+00> : vector<8x8xf32>
    %63 = tpu.matmul %62, %33, %cst_48 {dimension_numbers = #tpu.dot_dimension_numbers<[1], [0], [0], [1], [0, 0, 1, 1], [], []>} : vector<8x64xf32>, vector<64x8xf32>, vector<8x8xf32> -> vector<8x8xf32>
    %64 = vector.extract_strided_slice %29 {offsets = [0, 344], sizes = [8, 8], strides = [1, 1]} : vector<8x512xf32> to vector<8x8xf32>
    %65 = arith.addf %63, %64 : vector<8x8xf32>
    %cst_49 = arith.constant 0.000000e+00 : f32
    %66 = vector.broadcast %cst_49 : f32 to vector<8x8xf32>
    %67 = arith.maximumf %65, %66 : vector<8x8xf32>
    %cst_50 = arith.constant dense<0.000000e+00> : vector<8x128xf32>
    %68 = tpu.matmul %67, %34, %cst_50 {dimension_numbers = #tpu.dot_dimension_numbers<[1], [0], [0], [1], [0, 0, 1, 1], [], []>} : vector<8x8xf32>, vector<8x128xf32>, vector<8x128xf32> -> vector<8x128xf32>
    %69 = vector.extract_strided_slice %29 {offsets = [0, 384], sizes = [8, 128], strides = [1, 1]} : vector<8x512xf32> to vector<8x128xf32>
    %70 = arith.mulf %68, %69 : vector<8x128xf32>
    %cst_51 = arith.constant dense<0.000000e+00> : vector<8x16xf32>
    %71 = tpu.matmul %70, %35, %cst_51 {dimension_numbers = #tpu.dot_dimension_numbers<[1], [0], [0], [1], [0, 0, 1, 1], [], []>} : vector<8x128xf32>, vector<128x16xf32>, vector<8x16xf32> -> vector<8x16xf32>
    %72 = vector.extract_strided_slice %29 {offsets = [0, 352], sizes = [8, 16], strides = [1, 1]} : vector<8x512xf32> to vector<8x16xf32>
    %73 = arith.addf %71, %72 : vector<8x16xf32>
    %c0_52 = arith.constant 0 : index
    %c0_53 = arith.constant 0 : index
    %74 = vector.load %arg17[%c0_52, %c0_53] : memref<8x16xf32, #tpu.memory_space<vmem>>, vector<8x16xf32>
    tpu.vector_store %arg17[%c0_52, %c0_53], %73 {strides = array<i32>} : memref<8x16xf32, #tpu.memory_space<vmem>>, vector<8x16xf32>,
    return
  }
  func.func @transform_0(%arg0: i32) -> (i32, i32) {
    %c0_i32 = arith.constant 0 : i32
    %c0_i32_0 = arith.constant 0 : i32
    return %arg0, %c0_i32 : i32, i32
  }
  func.func @transform_1(%arg0: i32) -> (i32, i32) {
    %c0_i32 = arith.constant 0 : i32
    %c0_i32_0 = arith.constant 0 : i32
    %c0_i32_1 = arith.constant 0 : i32
    return %c0_i32, %c0_i32_0 : i32, i32
  }
  func.func @transform_2(%arg0: i32) -> (i32, i32) {
    %c0_i32 = arith.constant 0 : i32
    %c0_i32_0 = arith.constant 0 : i32
    %c0_i32_1 = arith.constant 0 : i32
    return %c0_i32, %c0_i32_0 : i32, i32
  }
  func.func @transform_3(%arg0: i32) -> (i32, i32) {
    %c0_i32 = arith.constant 0 : i32
    %c0_i32_0 = arith.constant 0 : i32
    %c0_i32_1 = arith.constant 0 : i32
    return %c0_i32, %c0_i32_0 : i32, i32
  }
  func.func @transform_4(%arg0: i32) -> (i32, i32) {
    %c0_i32 = arith.constant 0 : i32
    %c0_i32_0 = arith.constant 0 : i32
    %c0_i32_1 = arith.constant 0 : i32
    return %c0_i32, %c0_i32_0 : i32, i32
  }
  func.func @transform_5(%arg0: i32) -> (i32, i32) {
    %c0_i32 = arith.constant 0 : i32
    %c0_i32_0 = arith.constant 0 : i32
    %c0_i32_1 = arith.constant 0 : i32
    return %c0_i32, %c0_i32_0 : i32, i32
  }
  func.func @transform_6(%arg0: i32) -> (i32, i32) {
    %c0_i32 = arith.constant 0 : i32
    %c0_i32_0 = arith.constant 0 : i32
    %c0_i32_1 = arith.constant 0 : i32
    return %c0_i32, %c0_i32_0 : i32, i32
  }
  func.func @transform_7(%arg0: i32) -> (i32, i32) {
    %c0_i32 = arith.constant 0 : i32
    %c0_i32_0 = arith.constant 0 : i32
    %c0_i32_1 = arith.constant 0 : i32
    return %c0_i32, %c0_i32_0 : i32, i32
  }
  func.func @transform_8(%arg0: i32) -> (i32, i32) {
    %c0_i32 = arith.constant 0 : i32
    %c0_i32_0 = arith.constant 0 : i32
    %c0_i32_1 = arith.constant 0 : i32
    return %c0_i32, %c0_i32_0 : i32, i32
  }
  func.func @transform_9(%arg0: i32) -> (i32, i32) {
    %c0_i32 = arith.constant 0 : i32
    %c0_i32_0 = arith.constant 0 : i32
    %c0_i32_1 = arith.constant 0 : i32
    return %c0_i32, %c0_i32_0 : i32, i32
  }
  func.func @transform_10(%arg0: i32) -> (i32, i32) {
    %c0_i32 = arith.constant 0 : i32
    %c0_i32_0 = arith.constant 0 : i32
    %c0_i32_1 = arith.constant 0 : i32
    return %c0_i32, %c0_i32_0 : i32, i32
  }
  func.func @transform_11(%arg0: i32) -> (i32, i32) {
    %c0_i32 = arith.constant 0 : i32
    %c0_i32_0 = arith.constant 0 : i32
    %c0_i32_1 = arith.constant 0 : i32
    return %c0_i32, %c0_i32_0 : i32, i32
  }
  func.func @transform_12(%arg0: i32) -> (i32, i32) {
    %c0_i32 = arith.constant 0 : i32
    %c0_i32_0 = arith.constant 0 : i32
    %c0_i32_1 = arith.constant 0 : i32
    return %c0_i32, %c0_i32_0 : i32, i32
  }
  func.func @transform_13(%arg0: i32) -> (i32, i32) {
    %c0_i32 = arith.constant 0 : i32
    %c0_i32_0 = arith.constant 0 : i32
    %c0_i32_1 = arith.constant 0 : i32
    return %c0_i32, %c0_i32_0 : i32, i32
  }
  func.func @transform_14(%arg0: i32) -> (i32, i32) {
    %c0_i32 = arith.constant 0 : i32
    %c0_i32_0 = arith.constant 0 : i32
    %c0_i32_1 = arith.constant 0 : i32
    return %c0_i32, %c0_i32_0 : i32, i32
  }
  func.func @transform_15(%arg0: i32) -> (i32, i32) {
    %c0_i32 = arith.constant 0 : i32
    %c0_i32_0 = arith.constant 0 : i32
    %c0_i32_1 = arith.constant 0 : i32
    return %c0_i32, %c0_i32_0 : i32, i32
  }
  func.func @transform_16(%arg0: i32) -> (i32, i32) {
    %c0_i32 = arith.constant 0 : i32
    %c0_i32_0 = arith.constant 0 : i32
    return %arg0, %c0_i32 : i32, i32
  }
}

</mosaic_0001>

<bundles_post_ra>
// kernel: tpu_custom_call.1
= control target key start
LH: loop header
LB: loop body
LE: loop exit
PB: predicated region body
PF: predicated region fallthrough
CT: control target
= control target key end

     0   :  { %s1248_s0 = inlined_call_operand.vmem [shape: f32[8,64], index: 0, kind: input, shape index: {}]   ;;  %s1249_s1 = inlined_call_operand.vmem [shape: f32[64,8], index: 1, kind: input, shape index: {}]   ;;  %s1250_s2 = inlined_call_operand.vmem [shape: f32[1,8], index: 2, kind: input, shape index: {}]   ;;  %s1251_s3 = inlined_call_operand.vmem [shape: f32[8,4], index: 3, kind: input, shape index: {}]   ;;  %s1252_s4 = inlined_call_operand.hbm [shape: f32[1,4], index: 4, kind: input, shape index: {}]   ;;  %s1253_s5 = inlined_call_operand.vmem [shape: f32[64,64], index: 5, kind: input, shape index: {}]   ;;  %s1254_s6 = inlined_call_operand.vmem [shape: f32[4,64], index: 6, kind: input, shape index: {}]   ;;  %s1255_s7 = inlined_call_operand.hbm [shape: f32[1,64], index: 7, kind: input, shape index: {}]   ;;  %s1256_s8 = inlined_call_operand.vmem [shape: f32[64,512], index: 8, kind: input, shape index: {}]   ;;  %s1257_s9 = inlined_call_operand.hbm [shape: f32[1,512], index: 9, kind: input, shape index: {}]   ;;  %s1258_s10 = inlined_call_operand.vmem [shape: f32[64,128], index: 10, kind: input, shape index: {}]   ;;  %s1259_s11 = inlined_call_operand.vmem [shape: f32[128,8], index: 11, kind: input, shape index: {}]   ;;  %s1260_s12 = inlined_call_operand.vmem [shape: f32[8,64], index: 12, kind: input, shape index: {}]   ;;  %s1261_s13 = inlined_call_operand.vmem [shape: f32[64,8], index: 13, kind: input, shape index: {}]   ;;  %s1262_s14 = inlined_call_operand.vmem [shape: f32[8,128], index: 14, kind: input, shape index: {}]   ;;  %s1263_s15 = inlined_call_operand.vmem [shape: f32[128,16], index: 15, kind: input, shape index: {}]   ;;  %s1264_s16 = inlined_call_operand.hbm [shape: f32[8,16], index: 16, kind: output, shape index: {}]  }
   0x1   :  { %1265 = sst [smem:[#allocation12_spill]] %s1248_s0 }
   0x2   :  { %21 = vsyncpa [#allocation3], 0 }
   0x3   :  { %22 = vsyncpa [#allocation6], 0  ;;  %s52_s23 = sshll.u32 %s1255_s7, 4  ;;  %s53_s23 = int_to_ptr.hbm [resolvable:$true] %s52_s23 }
   0x4   :  { %23 = vsyncpa [#allocation4], 0  ;;  %s802_s24 = smov [#allocation5]   ;;  %s37_s28 = sshll.u32 %s1252_s4, 4  ;;  %s38_s28 = int_to_ptr.hbm [resolvable:$true] %s37_s28 }
   0x5   :  { %s54_s25 = sshll.u32 %s802_s24, 4  ;;  %s803_s29 = smov [#allocation2]   ;;  %s55_s25 = int_to_ptr.vmem [resolvable:$true] %s54_s25 }
   0x6   :  { %57 = dma.hbm_to_vmem [thread:$0]  %s53_s23, 16, %s55_s25, [#allocation6]  }
   0x7   :  { %s39_s30 = sshll.u32 %s803_s29, 4  ;;  %s65_s18 = sshll.u32 %s1257_s9, 4  ;;  %s40_s30 = int_to_ptr.vmem [resolvable:$true] %s39_s30  ;;  %s66_s18 = int_to_ptr.hbm [resolvable:$true] %s65_s18 }
   0x8   :  { %42 = dma.hbm_to_vmem [thread:$0]  %s38_s28, 16, %s40_s30, [#allocation3]  }
   0x9   :  { %s804_s7 = smov [#allocation7]  }
   0xa   :  { %s67_s19 = sshll.u32 %s804_s7, 4  ;;  %s68_s19 = int_to_ptr.vmem [resolvable:$true] %s67_s19 }
   0xb   :  { %70 = dma.hbm_to_vmem [thread:$0]  %s66_s18, 64, %s68_s19, [#allocation6]  }
   0xc   :  { %796 = dma.done.wait [#allocation3], 16  }
   0xd   :  { %797 = vsyncadd [#allocation3], 4294967280 }
   0xe   :  { %798 = dma.done.wait [#allocation6], 80  }
   0xf   :  { %799 = vsyncadd [#allocation6], 4294967216  ;;  %v103_v0 = vld [vmem:[%s1249_s1 + $0x38] sm:$0xff]  ;;  %v102_v1 = vld [vmem:[%s1249_s1 + $0x30] sm:$0xff]  ;;  %s1266_s4 = sld [smem:[#allocation12_spill]]  ;;  %vm108_vm0 = vcmask 523264  }
  0x10   :  { %120 = vmatpush.msra.mxu0 %v103_v0  ;;  %v101_v2 = vld [vmem:[%s1249_s1 + $0x28] sm:$0xff]  ;;  %v100_v3 = vld [vmem:[%s1249_s1 + $0x20] sm:$0xff]  ;;  %v99_v4 = vld [vmem:[%s1249_s1 + $0x18] sm:$0xff]  ;;  %vm138_vm1 = vcmask 64512   ;;  %vm176_vm2 = vcmask 1043456   ;;  %vm172_vm3 = vcmask 31744  }
  0x11   :  { %v98_v5 = vld [vmem:[%s1249_s1 + $0x10] sm:$0xff]  ;;  %v97_v6 = vld [vmem:[%s1249_s1 + $0x8] sm:$0xff]  ;;  %v96_v7 = vld [vmem:[%s1249_s1] sm:$0xff]  ;;  %s807_s18 = smov 48   ;;  %s808_s7 = smov 32   ;;  %vm651_vm4 = vcmask 130048  }
  0x12   :  { %121 = vmatpush.msra.mxu0 %v102_v1  ;;  %v133_v9 = vld [vmem:[%s1251_s3] sm:$0xff]  ;;  %v170_v10 = vld [vmem:[%s1253_s5 + $0x38] sm:$0xff]  ;;  %v169_v11 = vld [vmem:[%s1253_s5 + $0x30] sm:$0xff]  ;;  %s809_s19 = smov 56  }
  0x13   :  { %157 = vmatpush.msra.mxu1 %v133_v9  ;;  %208 = vmatpush.msra.mxu3 %v170_v10  ;;  %v168_v12 = vld [vmem:[%s1253_s5 + $0x28] sm:$0xff]  ;;  %v167_v13 = vld [vmem:[%s1253_s5 + $0x20] sm:$0xff]  ;;  %v166_v14 = vld [vmem:[%s1253_s5 + $0x18] sm:$0xff] }
  0x14   :  { %122 = vmatpush.msra.mxu0 %v101_v2  ;;  %v697_v15 = vld [vmem:[%s1250_s2] ss:$0 sm:$0xff]  ;;  %v165_v19 = vld [vmem:[%s1253_s5 + $0x10] sm:$0xff]  ;;  %v164_v20 = vld [vmem:[%s1253_s5 + $0x8] sm:$0xff] }
  0x15   :  { %v932_v8 = vld [vmem:[%s1266_s4] sm:$0xff]  ;;  %209 = vmatpush.msra.mxu3 %v169_v11  ;;  %v255_v24 = vld [vmem:[%s1256_s8 + $0xe8] sm:$0xff]  ;;  %v257_v29 = vld [vmem:[%s1256_s8 + $0xf8] sm:$0xff] }
  0x16   :  { %123 = vmatpush.msra.mxu0 %v100_v3  ;;  %v171_v21 = vld [vmem:[%s1254_s6] sm:$0xf]  ;;  %v251_v26 = vld [vmem:[%s1256_s8 + $0xc8] sm:$0xff]  ;;  %v253_v30 = vld [vmem:[%s1256_s8 + $0xd8] sm:$0xff] }
  0x17   :  { %210 = vmatpush.msra.mxu3 %v168_v12  ;;  %v163_v22 = vld [vmem:[%s1253_s5] sm:$0xff]  ;;  %673 = vmatpush.msk.msra.mxu2 %vm176_vm2, %v171_v21  ;;  %v247_v28 = vld [vmem:[%s1256_s8 + $0xa8] sm:$0xff]  ;;  %v249_v33 = vld [vmem:[%s1256_s8 + $0xb8] sm:$0xff] }
  0x18   :  { %124 = vmatpush.msra.mxu0 %v99_v4  ;;  %v254_v23 = vld [vmem:[%s1256_s8 + $0xe0] sm:$0xff]  ;;  %v243_v32 = vld [vmem:[%s1256_s8 + $0x88] sm:$0xff]  ;;  %v245_v36 = vld [vmem:[%s1256_s8 + $0x98] sm:$0xff] }
  0x19   :  { %211 = vmatpush.msra.mxu3 %v167_v13  ;;  %v250_v25 = vld [vmem:[%s1256_s8 + $0xc0] sm:$0xff]  ;;  %279 = vmatpush.msrb.mxu1 %v254_v23  ;;  %v239_v35 = vld [vmem:[%s1256_s8 + $0x68] sm:$0xff]  ;;  %v256_v47 = vld [vmem:[%s1256_s8 + $0xf0] sm:$0xff] }
  0x1a   :  { %125 = vmatpush.msra.mxu0 %v98_v5  ;;  %v246_v27 = vld [vmem:[%s1256_s8 + $0xa0] sm:$0xff]  ;;  %v235_v38 = vld [vmem:[%s1256_s8 + $0x48] sm:$0xff]  ;;  %v241_v48 = vld [vmem:[%s1256_s8 + $0x78] sm:$0xff] }
  0x1b   :  { %212 = vmatpush.msra.mxu3 %v166_v14  ;;  %280 = vmatpush.msrb.mxu1 %v250_v25  ;;  %v242_v31 = vld [vmem:[%s1256_s8 + $0x80] sm:$0xff]  ;;  %v231_v40 = vld [vmem:[%s1256_s8 + $0x28] sm:$0xff]  ;;  %v358_v49 = vld [vmem:[%s1258_s10 + $0x38] sm:$0xff] }
  0x1c   :  { %126 = vmatpush.msra.mxu0 %v97_v6  ;;  %v238_v34 = vld [vmem:[%s1256_s8 + $0x60] sm:$0xff]  ;;  %v227_v42 = vld [vmem:[%s1256_s8 + $0x8] sm:$0xff]  ;;  %v252_v50 = vld [vmem:[%s1256_s8 + $0xd0] sm:$0xff] }
  0x1d   :  { %213 = vmatpush.msra.mxu3 %v165_v19  ;;  %281 = vmatpush.msrb.mxu1 %v246_v27  ;;  %v234_v37 = vld [vmem:[%s1256_s8 + $0x40] sm:$0xff]  ;;  %v237_v51 = vld [vmem:[%s1256_s8 + $0x58] sm:$0xff]  ;;  %v357_v52 = vld [vmem:[%s1258_s10 + $0x30] sm:$0xff] }
  0x1e   :  { %127 = vmatpush.msra.mxu0 %v96_v7  ;;  %v230_v39 = vld [vmem:[%s1256_s8 + $0x20] sm:$0xff]  ;;  %v248_v53 = vld [vmem:[%s1256_s8 + $0xb0] sm:$0xff]  ;;  %v233_v54 = vld [vmem:[%s1256_s8 + $0x38] sm:$0xff] }
  0x1f   :  { %671 = vmatmul.msk.f32.vlgmr.msra.gmra.mxu0 %vm108_vm0, %v932_v8  ;;  %214 = vmatpush.msra.mxu3 %v164_v20  ;;  %v226_v41 = vld [vmem:[%s1256_s8] sm:$0xff]  ;;  %v356_v55 = vld [vmem:[%s1258_s10 + $0x28] sm:$0xff]  ;;  %v244_v56 = vld [vmem:[%s1256_s8 + $0x90] sm:$0xff] }
  0x20   :  { %299 = vmatpush.msrb.mxu0 %v255_v24  ;;  %282 = vmatpush.msrb.mxu1 %v242_v31  ;;  %v698_v43 = vld [vmem:[#allocation2] ss:$0 sm:$0xff]  ;;  %v229_v57 = vld [vmem:[%s1256_s8 + $0x18] sm:$0xff]  ;;  %v240_v59 = vld [vmem:[%s1256_s8 + $0x70] sm:$0xff] }
  0x21   :  { %215 = vmatpush.msra.mxu3 %v163_v22  ;;  %v355_v58 = vld [vmem:[%s1258_s10 + $0x20] sm:$0xff]  ;;  %v354_v60 = vld [vmem:[%s1258_s10 + $0x18] sm:$0xff]  ;;  %v236_v61 = vld [vmem:[%s1256_s8 + $0x50] sm:$0xff] }
  0x22   :  { %675 = vmatmul.msk.f32.vlgmr.msra.gmra.mxu3 %vm108_vm0, %v932_v8  ;;  %300 = vmatpush.msrb.mxu0 %v251_v26  ;;  %v353_v62 = vld [vmem:[%s1258_s10 + $0x10] sm:$0xff]  ;;  %v352_v0 = vld [vmem:[%s1258_s10 + $0x8] sm:$0xff]  ;;  %v351_v2 = vld [vmem:[%s1258_s10] sm:$0xff]  ;;  %s805_s10 = smov 64  }
  0x23   :  { %339 = vmatpush.msrb.mxu3 %v257_v29  ;;  %283 = vmatpush.msrb.mxu1 %v238_v34  ;;  %v232_v63 = vld [vmem:[%s1256_s8 + $0x30] sm:$0xff]  ;;  %v374_v3 = vld [vmem:[%s1259_s11 + $0x78] sm:$0xff]  ;;  %v372_v5 = vld [vmem:[%s1259_s11 + $0x68] sm:$0xff] }
  0x24   :  { %301 = vmatpush.msrb.mxu0 %v247_v28  ;;  %v228_v1 = vld [vmem:[%s1256_s8 + $0x10] sm:$0xff]  ;;  %426 = vmatpush.msrb.mxu2 %v374_v3  ;;  %v371_v6 = vld [vmem:[%s1259_s11 + $0x60] sm:$0xff]  ;;  %v370_v7 = vld [vmem:[%s1259_s11 + $0x58] sm:$0xff] }
  0x25   :  { %340 = vmatpush.msrb.mxu3 %v253_v30  ;;  %284 = vmatpush.msrb.mxu1 %v234_v37  ;;  %v373_v4 = vld [vmem:[%s1259_s11 + $0x70] sm:$0xff]  ;;  %v368_v10 = vld [vmem:[%s1259_s11 + $0x48] sm:$0xff]  ;;  %v367_v11 = vld [vmem:[%s1259_s11 + $0x40] sm:$0xff] }
  0x26   :  { %302 = vmatpush.msrb.mxu0 %v243_v32  ;;  %427 = vmatpush.msrb.mxu2 %v373_v4  ;;  %v369_v9 = vld [vmem:[%s1259_s11 + $0x50] sm:$0xff]  ;;  %v366_v12 = vld [vmem:[%s1259_s11 + $0x38] sm:$0xff]  ;;  %v699_v14 = vld [vmem:[#allocation5] ss:$0 sm:$0xff] }
  0x27   :  { %341 = vmatpush.msrb.mxu3 %v249_v33  ;;  %285 = vmatpush.msrb.mxu1 %v230_v39  ;;  %v364_v20 = vld [vmem:[%s1259_s11 + $0x28] sm:$0xff]  ;;  %v363_v21 = vld [vmem:[%s1259_s11 + $0x20] sm:$0xff]  ;;  %v362_v22 = vld [vmem:[%s1259_s11 + $0x18] sm:$0xff] }
  0x28   :  { %303 = vmatpush.msrb.mxu0 %v239_v35  ;;  %428 = vmatpush.msrb.mxu2 %v372_v5  ;;  %v361_v23 = vld [vmem:[%s1259_s11 + $0x10] sm:$0xff]  ;;  %v359_v24 = vld [vmem:[%s1259_s11] sm:$0xff]  ;;  %v400_v3 = vld [vmem:[%s1263_s15 + $0x78] sm:$0xff] }
  0x29   :  { %342 = vmatpush.msrb.mxu3 %v245_v36  ;;  %286 = vmatpush.msrb.mxu1 %v226_v41  ;;  %v1146_v25 = vld [vmem:[#allocation7] sm:$0xf]  ;;  %v382_v39 = vld [vmem:[%s1261_s13 + $0x30] sm:$0xff]  ;;  %v398_v5 = vld [vmem:[%s1263_s15 + $0x68] sm:$0xff] }
  0x2a   :  { %304 = vmatpush.msrb.mxu0 %v235_v38  ;;  %429 = vmatpush.msrb.mxu2 %v371_v6  ;;  %v261_v26 = vperm.slane %v1146_v25, 1  ;;  %v260_v30 = vperm.slane %v1146_v25, 0  ;;  %v262_v31 = vperm.slane %v1146_v25, 2  ;;  %v375_v37 = vld [vmem:[%s1260_s12] sm:$0xff]  ;;  %v383_v38 = vld [vmem:[%s1261_s13 + $0x38] sm:$0xff]  ;;  %v399_v4 = vld [vmem:[%s1263_s15 + $0x70] sm:$0xff] }
  0x2b   :  { %343 = vmatpush.msrb.mxu3 %v241_v48  ;;  %v380_v41 = vld [vmem:[%s1261_s13 + $0x20] sm:$0xff]  ;;  %v377_v48 = vld [vmem:[%s1261_s13 + $0x8] sm:$0xff] }
  0x2c   :  { %305 = vmatpush.msrb.mxu0 %v231_v40  ;;  %430 = vmatpush.msrb.mxu2 %v370_v7  ;;  %v381_v40 = vld [vmem:[%s1261_s13 + $0x28] sm:$0xff]  ;;  %v397_v6 = vld [vmem:[%s1263_s15 + $0x60] sm:$0xff]  ;;  %v396_v7 = vld [vmem:[%s1263_s15 + $0x58] sm:$0xff] }
  0x2d   :  { %344 = vmatpush.msrb.mxu3 %v237_v51 }
  0x2e   :  { %306 = vmatpush.msrb.mxu0 %v227_v42  ;;  %431 = vmatpush.msrb.mxu2 %v369_v9  ;;  %v379_v42 = vld [vmem:[%s1261_s13 + $0x18] sm:$0xff]  ;;  %v395_v9 = vld [vmem:[%s1263_s15 + $0x50] sm:$0xff] }
  0x2f   :  { %345 = vmatpush.msrb.mxu3 %v233_v54 }
  0x30   :  { %319 = vmatpush.msra.mxu0 %v256_v47  ;;  %432 = vmatpush.msrb.mxu2 %v368_v10  ;;  %v394_v10 = vld [vmem:[%s1263_s15 + $0x48] sm:$0xff] }
  0x31   :  { %346 = vmatpush.msrb.mxu3 %v229_v57 }
  0x32   :  { %320 = vmatpush.msra.mxu0 %v252_v50  ;;  %433 = vmatpush.msrb.mxu2 %v367_v11  ;;  %v393_v11 = vld [vmem:[%s1263_s15 + $0x40] sm:$0xff] }
  0x33   :  { %485 = vmatpush.msra.mxu3 %v383_v38 }
  0x34   :  { %321 = vmatpush.msra.mxu0 %v248_v53  ;;  %434 = vmatpush.msrb.mxu2 %v366_v12  ;;  %v392_v12 = vld [vmem:[%s1263_s15 + $0x38] sm:$0xff] }
  0x35   :  { %486 = vmatpush.msra.mxu3 %v382_v39 }
  0x36   :  { %322 = vmatpush.msra.mxu0 %v244_v56 }
  0x37   :  { %487 = vmatpush.msra.mxu3 %v381_v40 }
  0x38   :  { %323 = vmatpush.msra.mxu0 %v240_v59 }
  0x39   :  { %488 = vmatpush.msra.mxu3 %v380_v41 }
  0x3a   :  { %324 = vmatpush.msra.mxu0 %v236_v61 }
  0x3b   :  { %489 = vmatpush.msra.mxu3 %v379_v42 }
  0x3c   :  { %325 = vmatpush.msra.mxu0 %v232_v63 }
  0x3e   :  { %326 = vmatpush.msra.mxu0 %v228_v1 }
  0x9c   :  { %v129_v16 = vpop.f32.mrf.mxu0 }
  0x9d   :  { %v130_v17 = vadd.f32 %v697_v15, %v129_v16  ;;  %v365_v15 = vld [vmem:[%s1259_s11 + $0x30] sm:$0xff] }
  0x9e   :  { %435 = vmatpush.msrb.mxu2 %v365_v15  ;;  %v389_v15 = vld [vmem:[%s1263_s15 + $0x20] sm:$0xff] }
  0x9f   :  { %v132_v18 = vmax.f32 %v130_v17, 0.0 }
  0xa0   :  { %436 = vmatpush.msrb.mxu2 %v364_v20 }
  0xa1   :  { %672 = vmatmul.msk.f32.vlgmr.msra.gmra.mxu1 %vm138_vm1, %v132_v18 }
  0xa2   :  { %409 = vmatpush.msra.mxu1 %v358_v49  ;;  %437 = vmatpush.msrb.mxu2 %v363_v21  ;;  %v376_v49 = vld [vmem:[%s1261_s13] sm:$0xff] }
  0xa4   :  { %410 = vmatpush.msra.mxu1 %v357_v52  ;;  %438 = vmatpush.msrb.mxu2 %v362_v22  ;;  %v386_v22 = vld [vmem:[%s1263_s15 + $0x8] sm:$0xff] }
  0xa5   :  { %v217_v13 = vpop.f32.mrf.mxu3 }
  0xa6   :  { %411 = vmatpush.msra.mxu1 %v356_v55  ;;  %439 = vmatpush.msrb.mxu2 %v361_v23  ;;  %v385_v23 = vld [vmem:[%s1263_s15] sm:$0xff] }
  0xa8   :  { %412 = vmatpush.msra.mxu1 %v355_v58 }
  0xaa   :  { %413 = vmatpush.msra.mxu1 %v354_v60 }
  0xac   :  { %414 = vmatpush.msra.mxu1 %v353_v62 }
  0xae   :  { %415 = vmatpush.msra.mxu1 %v352_v0  ;;  %v384_v0 = vld [vmem:[%s1262_s14] sm:$0xff] }
  0xb0   :  { %416 = vmatpush.msra.mxu1 %v351_v2 }
 0x11e   :  { %v159_v44 = vpop.f32.mrf.mxu1 }
 0x11f   :  { %v160_v45 = vadd.f32 %v698_v43, %v159_v44  ;;  %v378_v43 = vld [vmem:[%s1261_s13 + $0x10] sm:$0xff] }
 0x120   :  { %490 = vmatpush.msra.mxu3 %v378_v43 }
 0x121   :  { %v162_v46 = vmax.f32 %v160_v45, 0.0 }
 0x122   :  { %491 = vmatpush.msra.mxu3 %v377_v48 }
 0x123   :  { %674 = vmatmul.msk.f32.vlgmr.msra.gmra.mxu2 %vm172_vm3, %v162_v46 }
 0x124   :  { %492 = vmatpush.msra.mxu3 %v376_v49 }
 0x1a6   :  { %v197_v16 = vpop.f32.mrf.mxu2 }
 0x1a7   :  { %v218_v17 = vadd.f32 %v217_v13, %v197_v16  ;;  %v391_v13 = vld [vmem:[%s1263_s15 + $0x30] sm:$0xff]  ;;  %v388_v16 = vld [vmem:[%s1263_s15 + $0x18] sm:$0xff] }
 0x1a9   :  { %v224_v18 = vadd.f32 %v699_v14, %v218_v17  ;;  %v390_v14 = vld [vmem:[%s1263_s15 + $0x28] sm:$0xff]  ;;  %v387_v17 = vld [vmem:[%s1263_s15 + $0x10] sm:$0xff] }
 0x1ab   :  { %v225_v19 = vmax.f32 %v224_v18, 0.0 }
 0x1ad   :  { %676 = vmatmul.msk.f32.vlgmr.msrb.gmra.mxu1 %vm108_vm0, %v225_v19  ;;  %677 = vmatmul.msk.f32.vlgmr.msrb.gmra.mxu0 %vm108_vm0, %v225_v19 }
 0x1ae   :  { %679 = vmatmul.msk.f32.vlgmr.msrb.gmra.mxu3 %vm108_vm0, %v225_v19  ;;  %465 = vmatpush.msrb.mxu1 %v375_v37 }
 0x1af   :  { %540 = vmatpush.msrb.mxu0 %v383_v38  ;;  %591 = vmatpush.msrb.mxu3 %v383_v38 }
 0x1b1   :  { %541 = vmatpush.msrb.mxu0 %v382_v39  ;;  %592 = vmatpush.msrb.mxu3 %v382_v39 }
 0x1b3   :  { %542 = vmatpush.msrb.mxu0 %v381_v40  ;;  %593 = vmatpush.msrb.mxu3 %v381_v40 }
 0x1b5   :  { %678 = vmatmul.msk.f32.vlgmr.msra.gmra.mxu0 %vm108_vm0, %v225_v19  ;;  %680 = vmatmul.msk.f32.vlgmr.msra.gmra.mxu1 %vm108_vm0, %v932_v8  ;;  %v360_v8 = vld [vmem:[%s1259_s11 + $0x8] sm:$0xff]  ;;  %s806_s11 = smov 40  }
 0x1b6   :  { %440 = vmatpush.msrb.mxu2 %v360_v8  ;;  %516 = vmatpush.msra.mxu1 %v375_v37  ;;  %v263_v8 = vperm.slane %v1146_v25, 3 }
 0x1b7   :  { %543 = vmatpush.msrb.mxu0 %v380_v41  ;;  %594 = vmatpush.msrb.mxu3 %v380_v41 }
 0x1b8   :  { %441 = vmatpush.msrb.mxu2 %v359_v24 }
 0x1b9   :  { %544 = vmatpush.msrb.mxu0 %v379_v42  ;;  %595 = vmatpush.msrb.mxu3 %v379_v42 }
 0x1ba   :  { %631 = vmatpush.msra.mxu2 %v400_v3 }
 0x1bb   :  { %545 = vmatpush.msrb.mxu0 %v378_v43  ;;  %596 = vmatpush.msrb.mxu3 %v378_v43 }
 0x1bc   :  { %632 = vmatpush.msra.mxu2 %v399_v4 }
 0x1bd   :  { %546 = vmatpush.msrb.mxu0 %v377_v48  ;;  %597 = vmatpush.msrb.mxu3 %v377_v48 }
 0x1be   :  { %633 = vmatpush.msra.mxu2 %v398_v5 }
 0x1bf   :  { %547 = vmatpush.msrb.mxu0 %v376_v49  ;;  %598 = vmatpush.msrb.mxu3 %v376_v49 }
 0x1c0   :  { %634 = vmatpush.msra.mxu2 %v397_v6 }
 0x1c2   :  { %635 = vmatpush.msra.mxu2 %v396_v7 }
 0x1c4   :  { %636 = vmatpush.msra.mxu2 %v395_v9 }
 0x1c6   :  { %637 = vmatpush.msra.mxu2 %v394_v10 }
 0x1c8   :  { %638 = vmatpush.msra.mxu2 %v393_v11 }
 0x1ca   :  { %639 = vmatpush.msra.mxu2 %v392_v12 }
 0x1cc   :  { %640 = vmatpush.msra.mxu2 %v391_v13 }
 0x1ce   :  { %641 = vmatpush.msra.mxu2 %v390_v14 }
 0x1d0   :  { %642 = vmatpush.msra.mxu2 %v389_v15 }
 0x1d2   :  { %643 = vmatpush.msra.mxu2 %v388_v16 }
 0x1d4   :  { %644 = vmatpush.msra.mxu2 %v387_v17 }
 0x1d6   :  { %645 = vmatpush.msra.mxu2 %v386_v22 }
 0x1d8   :  { %646 = vmatpush.msra.mxu2 %v385_v23 }
 0x22a   :  { %v288_v27 = vpop.f32.mrf.mxu1  ;;  %v308_v28 = vpop.f32.mrf.mxu0 }
 0x22b   :  { %v309_v29 = vadd.f32 %v308_v28, %v261_v26  ;;  %v289_v32 = vadd.f32 %v288_v27, %v260_v30 }
 0x22d   :  { %522 = vrot.lane.b32.xlu1 %v309_v29, %s805_s10 }
 0x231   :  { %v348_v52 = vpop.f32.mrf.mxu3 }
 0x232   :  { %v328_v33 = vpop.f32.mrf.mxu0  ;;  %v418_v34 = vpop.f32.mrf.mxu1  ;;  %v349_v24 = vadd.f32 %v348_v52, %v263_v8 }
 0x233   :  { %v1151_v35 = vadd.f32 %v328_v33, %v262_v31  ;;  %v421_v36 = vmul.f32 %v418_v34, %v289_v32 }
 0x235   :  { %577 = vrot.lane.b32.xlu2 %v1151_v35, %s806_s11  ;;  %423 = vrot.lane.b32.xlu0 %v1151_v35, %s805_s10  ;;  %s810_s10 = smov [#allocation8]  }
 0x236   :  { %526 = vrot.lane.b32.xlu1 %v1151_v35, %s807_s18  ;;  %442 = vmatmul.f32.vlgmr.msrb.gmra.mxu2 %v421_v36  ;;  %s658_s11 = sshll.u32 %s810_s10, 4  ;;  %s659_s11 = int_to_ptr.vmem [resolvable:$true] %s658_s11 }
 0x23d   :  { %628 = vrot.lane.b32.xlu2 %v1151_v35, %s808_s7  ;;  %471 = vrot.lane.b32.xlu0 %v1151_v35, %s809_s19  ;;  %s660_s7 = sshll.u32 %s1264_s16, 4  ;;  %s661_s7 = int_to_ptr.hbm [resolvable:$true] %s660_s7 }
 0x28f   :  { %v578_v18 = vpop.permute.xlu2 %577 }
 0x297   :  { %v629_v28 = vpop.permute.xlu2 %628 }
 0x29f   :  { %v523_v57 = vpop.permute.xlu1 %522 }
 0x2a7   :  { %v424_v44 = vpop.permute.xlu0 %423 }
 0x2a8   :  { %v527_v60 = vpop.permute.xlu1 %526 }
 0x2af   :  { %v472_v53 = vpop.permute.xlu0 %471 }
 0x2b9   :  { %v443_v45 = vpop.f32.mrf.mxu2 }
 0x2ba   :  { %v444_v46 = vadd.f32 %v443_v45, %v424_v44 }
 0x2bc   :  { %v446_v47 = vmax.f32 %v444_v46, 0.0 }
 0x2be   :  { %681 = vmatmul.msk.f32.vlgmr.msrb.gmra.mxu1 %vm138_vm1, %v446_v47 }
 0x2bf   :  { %571 = vmatpush.msrb.mxu1 %v375_v37 }
 0x33b   :  { %v467_v50 = vpop.f32.mrf.mxu1 }
 0x33c   :  { %v470_v51 = vmul.f32 %v467_v50, %v309_v29 }
 0x33e   :  { %682 = vmatmul.msk.f32.vlgmr.msra.gmra.mxu3 %vm108_vm0, %v470_v51 }
 0x3c1   :  { %v494_v54 = vpop.f32.mrf.mxu3 }
 0x3c2   :  { %v495_v55 = vadd.f32 %v494_v54, %v472_v53 }
 0x3c4   :  { %v497_v56 = vmax.f32 %v495_v55, 0.0 }
 0x3c6   :  { %683 = vmatmul.msk.f32.vlgmr.msra.gmra.mxu1 %vm138_vm1, %v497_v56 }
 0x3c7   :  { %622 = vmatpush.msra.mxu1 %v384_v0 }
 0x443   :  { %v518_v58 = vpop.f32.mrf.mxu1 }
 0x444   :  { %v525_v59 = vmul.f32 %v523_v57, %v518_v58 }
 0x446   :  { %684 = vmatmul.msk.f32.vlgmr.msrb.gmra.mxu0 %vm108_vm0, %v525_v59 }
 0x4c3   :  { %v549_v61 = vpop.f32.mrf.mxu0 }
 0x4c4   :  { %v550_v62 = vadd.f32 %v549_v61, %v527_v60 }
 0x4c6   :  { %v552_v63 = vmax.f32 %v550_v62, 0.0 }
 0x4c8   :  { %685 = vmatmul.msk.f32.vlgmr.msrb.gmra.mxu1 %vm138_vm1, %v552_v63 }
 0x545   :  { %v573_v1 = vpop.f32.mrf.mxu1 }
 0x546   :  { %v576_v2 = vmul.f32 %v573_v1, %v1151_v35 }
 0x548   :  { %686 = vmatmul.msk.f32.vlgmr.msrb.gmra.mxu3 %vm108_vm0, %v576_v2 }
 0x5cb   :  { %v600_v19 = vpop.f32.mrf.mxu3 }
 0x5cc   :  { %v601_v20 = vadd.f32 %v600_v19, %v578_v18 }
 0x5ce   :  { %v603_v21 = vmax.f32 %v601_v20, 0.0 }
 0x5d0   :  { %687 = vmatmul.msk.f32.vlgmr.msra.gmra.mxu1 %vm138_vm1, %v603_v21 }
 0x64d   :  { %v624_v26 = vpop.f32.mrf.mxu1 }
 0x64e   :  { %v627_v27 = vmul.f32 %v624_v26, %v349_v24 }
 0x650   :  { %647 = vmatmul.f32.vlgmr.msra.gmra.mxu2 %v627_v27 }
 0x6d3   :  { %v648_v29 = vpop.f32.mrf.mxu2 }
 0x6d4   :  { %v649_v30 = vadd.f32 %v648_v29, %v629_v28 }
 0x6d6   :  { %652 = vst.msk [vmem:[#allocation8] sm:$0xff] %vm651_vm4, %v649_v30 }
 0x6d7   :  { %663 = dma.vmem_to_hbm [thread:$0]  %s659_s11, 128, %s661_s7, [#allocation4]  }
 0x6d8   :  { %800 = dma.done.wait [#allocation4], 128  }
 0x6d9   :  { %801 = vsyncadd [#allocation4], 4294967168 }
 0x6da   :  { %668 = vsyncpa [#allocation3], 1 }
 0x6db   :  { %669 = vsyncpa [#allocation6], 1 }
 0x6dc   :  { %670 = vsyncpa [#allocation4], 1 }

</bundles_post_ra>
